<compile_context>
chip_gen: v6e
topology: v6e:2x2x1
jax: 0.10.0
libtpu: 0.0.40
codegen_flags: <defaults>
</compile_context>

<pallas_src>
import math

import jax
import jax.numpy as jnp
from jax.experimental import pallas as pl
from jax.experimental.pallas import tpu as pltpu

LANE = 128      # padded hidden width (MXU lane dim)
IN_PAD = 8      # padded input feature width  (x, y, t -> 8 sublanes)
OUT_PAD = 8     # padded output feature width (u, v, p, phi -> 8 sublanes)
MAX_TM = 2048   # largest batch tile (lanes per grid step)


def _round_up(n: int, m: int) -> int:
    return ((n + m - 1) // m) * m


def _bf16_act_supported() -> bool:
    """v6e / v7x have bf16-capable VPU/EUP; v5e (and older) do not."""
    try:
        kind = jax.devices()[0].device_kind.lower()
    except Exception:
        return False
    return ("v6" in kind) or ("v7" in kind)


def _choose_tiling(n: int) -> tuple[int, int]:
    """Pick the batch tile TM (lane dim, multiple of 128) and padded batch.

    Large TM amortizes the ~0.35us per-grid-step overhead; we keep >= 2 grid
    steps and force an EVEN step count so v7x's 2 TensorCores get equal work.
    Per-step VMEM stays tiny (< ~2 MiB even at TM=2048) on every generation.
    """
    n128 = _round_up(max(n, 1), 128)
    tm = 128
    for cand in (MAX_TM, 1024, 512, 256, 128):
        if n128 >= 2 * cand:
            tm = cand
            break
    n_pad = _round_up(n128, 2 * tm)   # even number of grid steps
    return tm, n_pad


def _make_mlp_kernel(n_layers: int, act_dtype):
    """Kernel refs: (x_ref, w0, b0, ..., w{L-1}, b{L-1}, o_ref).

    Everything is computed in transposed (feature-major) form:
        h : (in_pad, TM)   ->   h_new = W_t @ h + b,  W_t : (out_pad, in_pad)
    tanh after every layer except the last (matches the PyTorch forward).
    """

    def kernel(*refs):
        x_ref = refs[0]
        o_ref = refs[-1]
        wb = refs[1:-1]

        h = x_ref[...]                                   # (IN_PAD, TM) f32
        for li in range(n_layers):
            w = wb[2 * li][...]                          # (out_pad, in_pad)
            b = wb[2 * li + 1][...]                      # (out_pad, 1) f32
            rhs = h if h.dtype == w.dtype else h.astype(w.dtype)
            acc = jnp.dot(w, rhs, preferred_element_type=jnp.float32) + b
            if li < n_layers - 1:
                h = jnp.tanh(acc.astype(act_dtype))      # bf16 on v6e/v7x, f32 on v5e
            else:
                h = acc                                  # last layer stays f32
        o_ref[...] = h                                   # (OUT_PAD, TM) f32, lane-dense

    return kernel


def pinn_forward_pallas(x, y, t, weights, biases, *, matmul_dtype=jnp.bfloat16):
    """Forward pass of PhysicsInformedNN.

    x, y, t : (N, 1) float32
    weights : list of (in_dim, out_dim) float32 (already transposed vs torch)
    biases  : list of (out_dim,) float32
    returns : tuple of 4 arrays, each (N, 1) -> (u, v, p, phi)
    """
    n_layers = len(weights)
    in_dim = weights[0].shape[0]
    out_dim = weights[-1].shape[1]
    assert out_dim == 4, "PINN forward splits the last layer into 4 outputs"
    assert in_dim <= IN_PAD and out_dim <= OUT_PAD
    assert all(w.shape[1] <= LANE for w in weights[:-1])
    assert all(w.shape[0] <= LANE for w in weights[1:])

    inputs = jnp.concatenate([x, y, t], axis=1).astype(jnp.float32)  # (N, 3)
    n = inputs.shape[0]
    tm, n_pad = _choose_tiling(n)

    # Lane-dense packed input: features on sublanes, batch on lanes.
    x_p = jnp.zeros((IN_PAD, n_pad), jnp.float32).at[:in_dim, :n].set(inputs.T)

    # Transposed, padded weights / biases:
    #   W0_t : (LANE,    IN_PAD) f32            (K=8, cheap; keeps input precision)
    #   Wi_t : (LANE,    LANE)   matmul_dtype   (bf16 by default, MXU-native)
    #   WL_t : (OUT_PAD, LANE)   matmul_dtype
    #   b    : (out_pad, 1)      f32            (broadcast over the lane axis)
    w_pads, b_pads = [], []
    for li, (w, b) in enumerate(zip(weights, biases)):
        wi, wo = w.shape
        rows = OUT_PAD if li == n_layers - 1 else LANE     # padded out dim
        cols = IN_PAD if li == 0 else LANE                 # padded in dim
        wdt = jnp.float32 if li == 0 else matmul_dtype
        wt = jnp.transpose(w).astype(wdt)                  # (out, in)
        w_pads.append(jnp.zeros((rows, cols), wdt).at[:wo, :wi].set(wt))
        b_pads.append(
            jnp.zeros((rows, 1), jnp.float32).at[:wo, 0].set(b.astype(jnp.float32)))

    # bf16 activations/tanh only when the chip's VPU/EUP support it and the
    # matmuls are bf16 anyway (otherwise keep the tighter f32 path).
    use_bf16_act = (jnp.dtype(matmul_dtype) == jnp.dtype(jnp.bfloat16)
                    and _bf16_act_supported())
    act_dtype = jnp.bfloat16 if use_bf16_act else jnp.float32

    kernel = _make_mlp_kernel(n_layers, act_dtype)

    in_specs = [pl.BlockSpec((IN_PAD, tm), lambda i: (0, i))]
    operands = [x_p]
    for w_p, b_p in zip(w_pads, b_pads):
        # Grid-invariant operands: constant index_map -> fetched once, VMEM-resident.
        in_specs.append(pl.BlockSpec(w_p.shape, lambda i: (0, 0)))
        in_specs.append(pl.BlockSpec(b_p.shape, lambda i: (0, 0)))
        operands.append(w_p)
        operands.append(b_p)

    # Advisory cost hint so XLA schedules the concat/pad/transpose around the kernel.
    flops = 2 * n_pad * sum(wp.shape[0] * wp.shape[1] for wp in w_pads)
    bytes_accessed = (
        x_p.size * 4
        + OUT_PAD * n_pad * 4
        + sum(int(wp.size) * wp.dtype.itemsize for wp in w_pads)
        + sum(int(bp.size) * 4 for bp in b_pads))
    cost = pl.CostEstimate(
        flops=int(flops),
        transcendentals=int(n_pad * LANE * (n_layers - 1)),
        bytes_accessed=int(bytes_accessed))

    out = pl.pallas_call(
        kernel,
        out_shape=jax.ShapeDtypeStruct((OUT_PAD, n_pad), jnp.float32),
        grid_spec=pltpu.PrefetchScalarGridSpec(
            num_scalar_prefetch=0,
            grid=(n_pad // tm,),
            in_specs=in_specs,
            out_specs=pl.BlockSpec((OUT_PAD, tm), lambda i: (0, i)),
        ),
        compiler_params=pltpu.CompilerParams(
            dimension_semantics=("parallel",),
        ),
        cost_estimate=cost,
    )(*operands)

    out = out[:out_dim, :n]                       # (4, N), lane-dense slab
    # torch .split(1, dim=1) -> 4 tensors of shape (N, 1)
    return tuple(out[i:i + 1, :].T for i in range(out_dim))


def _xavier_normal(key, shape):
    # torch.nn.init.xavier_normal_ on weight of shape (out, in):
    # std = sqrt(2 / (fan_in + fan_out))
    fan_out, fan_in = shape
    std = math.sqrt(2.0 / (fan_in + fan_out))
    return std * jax.random.normal(key, shape, dtype=jnp.float32)


def init_params(key, layers):
    """Deterministic init matching the module __init__ (xavier_normal weights,
    zero bias).  Weights stored as (in, out) like the x @ W layout."""
    weights, biases = [], []
    for in_dim, out_dim in zip(layers[:-1], layers[1:]):
        key, sub = jax.random.split(key)
        w_torch = _xavier_normal(sub, (out_dim, in_dim))  # torch layout (out, in)
        weights.append(jnp.transpose(w_torch))            # (in, out)
        biases.append(jnp.zeros((out_dim,), jnp.float32))
    return weights, biases


def pinn_forward_ref(x, y, t, weights, biases):
    """Pure-JAX reference (mirrors the PyTorch forward)."""
    h = jnp.concatenate([x, y, t], axis=1).astype(jnp.float32)
    for w, b in zip(weights[:-1], biases[:-1]):
        h = jnp.tanh(h @ w + b)
    out = h @ weights[-1] + biases[-1]
    return tuple(out[:, i:i + 1] for i in range(out.shape[1]))


if __name__ == "__main__":
    layers = [3, 20, 20, 20, 4]
    N = 256

    key = jax.random.PRNGKey(0)
    k_param, kx, ky, kt = jax.random.split(key, 4)

    weights, biases = init_params(k_param, layers)
    x = jax.random.normal(kx, (N, 1), dtype=jnp.float32)
    y = jax.random.normal(ky, (N, 1), dtype=jnp.float32)
    t = jax.random.normal(kt, (N, 1), dtype=jnp.float32)

    ref = pinn_forward_ref(x, y, t, weights, biases)

    # Default fast path: bf16 hidden/last matmuls (+ bf16 tanh on v6e/v7x).
    out_bf16 = pinn_forward_pallas(x, y, t, weights, biases)
    jax.block_until_ready(out_bf16)
    for got, want in zip(out_bf16, ref):
        assert got.shape == (N, 1)
        assert jnp.allclose(got, want, atol=5e-2, rtol=5e-2)

    # Full-f32 path for a tighter numerical check (also the path to use for
    # any gradient-based PINN training, where bf16 error would be amplified).
    out_f32 = pinn_forward_pallas(x, y, t, weights, biases,
                                  matmul_dtype=jnp.float32)
    jax.block_until_ready(out_f32)
    for got, want in zip(out_f32, ref):
        assert got.shape == (N, 1)
        assert jnp.allclose(got, want, atol=1e-3, rtol=1e-3)

    print("KERNEL_OK")
</pallas_src>

<mosaic_0001>
module attributes {stable_mosaic.version = 11 : i64} {
  func.func @kernel(%arg0: i32, %arg1: memref<8x128xf32, #tpu.memory_space<vmem>>, %arg2: memref<128x8xf32, #tpu.memory_space<vmem>>, %arg3: memref<128x1xf32, #tpu.memory_space<vmem>>, %arg4: memref<128x128xbf16, #tpu.memory_space<vmem>>, %arg5: memref<128x1xf32, #tpu.memory_space<vmem>>, %arg6: memref<128x128xbf16, #tpu.memory_space<vmem>>, %arg7: memref<128x1xf32, #tpu.memory_space<vmem>>, %arg8: memref<8x128xbf16, #tpu.memory_space<vmem>>, %arg9: memref<8x1xf32, #tpu.memory_space<vmem>>, %arg10: memref<8x128xf32, #tpu.memory_space<vmem>>) attributes {dimension_semantics = [#tpu.dimension_semantics<parallel>], iteration_bounds = array<i64: 2>, scalar_prefetch = 0 : i64, scratch_operands = 0 : i64, tpu.core_type = #tpu.core_type<tc>, window_params = [{transform_indices = @transform_0, window_bounds = array<i64: 8, 128>}, {pipeline_mode = #tpu.pipeline_mode<synchronous>, transform_indices = @transform_1, window_bounds = array<i64: 128, 8>}, {pipeline_mode = #tpu.pipeline_mode<synchronous>, transform_indices = @transform_2, window_bounds = array<i64: 128, 1>}, {pipeline_mode = #tpu.pipeline_mode<synchronous>, transform_indices = @transform_3, window_bounds = array<i64: 128, 128>}, {pipeline_mode = #tpu.pipeline_mode<synchronous>, transform_indices = @transform_4, window_bounds = array<i64: 128, 1>}, {pipeline_mode = #tpu.pipeline_mode<synchronous>, transform_indices = @transform_5, window_bounds = array<i64: 128, 128>}, {pipeline_mode = #tpu.pipeline_mode<synchronous>, transform_indices = @transform_6, window_bounds = array<i64: 128, 1>}, {pipeline_mode = #tpu.pipeline_mode<synchronous>, transform_indices = @transform_7, window_bounds = array<i64: 8, 128>}, {pipeline_mode = #tpu.pipeline_mode<synchronous>, transform_indices = @transform_8, window_bounds = array<i64: 8, 1>}, {transform_indices = @transform_9, window_bounds = array<i64: 8, 128>}]} {
    %c0 = arith.constant 0 : index
    %c0_0 = arith.constant 0 : index
    %0 = vector.load %arg1[%c0, %c0_0] : memref<8x128xf32, #tpu.memory_space<vmem>>, vector<8x128xf32>
    %c0_1 = arith.constant 0 : index
    %c0_2 = arith.constant 0 : index
    %1 = vector.load %arg2[%c0_1, %c0_2] : memref<128x8xf32, #tpu.memory_space<vmem>>, vector<128x8xf32>
    %c0_3 = arith.constant 0 : index
    %c0_4 = arith.constant 0 : index
    %2 = vector.load %arg3[%c0_3, %c0_4] : memref<128x1xf32, #tpu.memory_space<vmem>>, vector<128x1xf32>
    %cst = arith.constant dense<0.000000e+00> : vector<128x128xf32>
    %3 = tpu.matmul %1, %0, %cst {dimension_numbers = #tpu.dot_dimension_numbers<[1], [0], [0], [1], [0, 0, 1, 1], [], []>} : vector<128x8xf32>, vector<8x128xf32>, vector<128x128xf32> -> vector<128x128xf32>
    %4 = vector.broadcast %2 : vector<128x1xf32> to vector<128x128xf32>
    %5 = arith.addf %3, %4 : vector<128x128xf32>
    %6 = math.tanh %5 : vector<128x128xf32>
    %c0_5 = arith.constant 0 : index
    %c0_6 = arith.constant 0 : index
    %7 = vector.load %arg4[%c0_5, %c0_6] : memref<128x128xbf16, #tpu.memory_space<vmem>>, vector<128x128xbf16>
    %c0_7 = arith.constant 0 : index
    %c0_8 = arith.constant 0 : index
    %8 = vector.load %arg5[%c0_7, %c0_8] : memref<128x1xf32, #tpu.memory_space<vmem>>, vector<128x1xf32>
    %9 = arith.truncf %6 : vector<128x128xf32> to vector<128x128xbf16>
    %cst_9 = arith.constant dense<0.000000e+00> : vector<128x128xf32>
    %10 = tpu.matmul %7, %9, %cst_9 {dimension_numbers = #tpu.dot_dimension_numbers<[1], [0], [0], [1], [0, 0, 1, 1], [], []>} : vector<128x128xbf16>, vector<128x128xbf16>, vector<128x128xf32> -> vector<128x128xf32>
    %11 = vector.broadcast %8 : vector<128x1xf32> to vector<128x128xf32>
    %12 = arith.addf %10, %11 : vector<128x128xf32>
    %13 = math.tanh %12 : vector<128x128xf32>
    %c0_10 = arith.constant 0 : index
    %c0_11 = arith.constant 0 : index
    %14 = vector.load %arg6[%c0_10, %c0_11] : memref<128x128xbf16, #tpu.memory_space<vmem>>, vector<128x128xbf16>
    %c0_12 = arith.constant 0 : index
    %c0_13 = arith.constant 0 : index
    %15 = vector.load %arg7[%c0_12, %c0_13] : memref<128x1xf32, #tpu.memory_space<vmem>>, vector<128x1xf32>
    %16 = arith.truncf %13 : vector<128x128xf32> to vector<128x128xbf16>
    %cst_14 = arith.constant dense<0.000000e+00> : vector<128x128xf32>
    %17 = tpu.matmul %14, %16, %cst_14 {dimension_numbers = #tpu.dot_dimension_numbers<[1], [0], [0], [1], [0, 0, 1, 1], [], []>} : vector<128x128xbf16>, vector<128x128xbf16>, vector<128x128xf32> -> vector<128x128xf32>
    %18 = vector.broadcast %15 : vector<128x1xf32> to vector<128x128xf32>
    %19 = arith.addf %17, %18 : vector<128x128xf32>
    %20 = math.tanh %19 : vector<128x128xf32>
    %c0_15 = arith.constant 0 : index
    %c0_16 = arith.constant 0 : index
    %21 = vector.load %arg8[%c0_15, %c0_16] : memref<8x128xbf16, #tpu.memory_space<vmem>>, vector<8x128xbf16>
    %c0_17 = arith.constant 0 : index
    %c0_18 = arith.constant 0 : index
    %22 = vector.load %arg9[%c0_17, %c0_18] : memref<8x1xf32, #tpu.memory_space<vmem>>, vector<8x1xf32>
    %23 = arith.truncf %20 : vector<128x128xf32> to vector<128x128xbf16>
    %cst_19 = arith.constant dense<0.000000e+00> : vector<8x128xf32>
    %24 = tpu.matmul %21, %23, %cst_19 {dimension_numbers = #tpu.dot_dimension_numbers<[1], [0], [0], [1], [0, 0, 1, 1], [], []>} : vector<8x128xbf16>, vector<128x128xbf16>, vector<8x128xf32> -> vector<8x128xf32>
    %25 = vector.broadcast %22 : vector<8x1xf32> to vector<8x128xf32>
    %26 = arith.addf %24, %25 : vector<8x128xf32>
    %c0_20 = arith.constant 0 : index
    %c0_21 = arith.constant 0 : index
    %27 = vector.load %arg10[%c0_20, %c0_21] : memref<8x128xf32, #tpu.memory_space<vmem>>, vector<8x128xf32>
    tpu.vector_store %arg10[%c0_20, %c0_21], %26 {strides = array<i32>} : memref<8x128xf32, #tpu.memory_space<vmem>>, vector<8x128xf32>,
    return
  }
  func.func @transform_0(%arg0: i32) -> (i32, i32) {
    %c0_i32 = arith.constant 0 : i32
    %c0_i32_0 = arith.constant 0 : i32
    return %c0_i32, %arg0 : i32, i32
  }
  func.func @transform_1(%arg0: i32) -> (i32, i32) {
    %c0_i32 = arith.constant 0 : i32
    %c0_i32_0 = arith.constant 0 : i32
    %c0_i32_1 = arith.constant 0 : i32
    return %c0_i32, %c0_i32_0 : i32, i32
  }
  func.func @transform_2(%arg0: i32) -> (i32, i32) {
    %c0_i32 = arith.constant 0 : i32
    %c0_i32_0 = arith.constant 0 : i32
    %c0_i32_1 = arith.constant 0 : i32
    return %c0_i32, %c0_i32_0 : i32, i32
  }
  func.func @transform_3(%arg0: i32) -> (i32, i32) {
    %c0_i32 = arith.constant 0 : i32
    %c0_i32_0 = arith.constant 0 : i32
    %c0_i32_1 = arith.constant 0 : i32
    return %c0_i32, %c0_i32_0 : i32, i32
  }
  func.func @transform_4(%arg0: i32) -> (i32, i32) {
    %c0_i32 = arith.constant 0 : i32
    %c0_i32_0 = arith.constant 0 : i32
    %c0_i32_1 = arith.constant 0 : i32
    return %c0_i32, %c0_i32_0 : i32, i32
  }
  func.func @transform_5(%arg0: i32) -> (i32, i32) {
    %c0_i32 = arith.constant 0 : i32
    %c0_i32_0 = arith.constant 0 : i32
    %c0_i32_1 = arith.constant 0 : i32
    return %c0_i32, %c0_i32_0 : i32, i32
  }
  func.func @transform_6(%arg0: i32) -> (i32, i32) {
    %c0_i32 = arith.constant 0 : i32
    %c0_i32_0 = arith.constant 0 : i32
    %c0_i32_1 = arith.constant 0 : i32
    return %c0_i32, %c0_i32_0 : i32, i32
  }
  func.func @transform_7(%arg0: i32) -> (i32, i32) {
    %c0_i32 = arith.constant 0 : i32
    %c0_i32_0 = arith.constant 0 : i32
    %c0_i32_1 = arith.constant 0 : i32
    return %c0_i32, %c0_i32_0 : i32, i32
  }
  func.func @transform_8(%arg0: i32) -> (i32, i32) {
    %c0_i32 = arith.constant 0 : i32
    %c0_i32_0 = arith.constant 0 : i32
    %c0_i32_1 = arith.constant 0 : i32
    return %c0_i32, %c0_i32_0 : i32, i32
  }
  func.func @transform_9(%arg0: i32) -> (i32, i32) {
    %c0_i32 = arith.constant 0 : i32
    %c0_i32_0 = arith.constant 0 : i32
    return %c0_i32, %arg0 : i32, i32
  }
}

</mosaic_0001>

<bundles_post_ra>
// kernel: tpu_custom_call.1
= control target key start
LH: loop header
LB: loop body
LE: loop exit
PB: predicated region body
PF: predicated region fallthrough
CT: control target
= control target key end

     0   :  { %14 = vsyncpa [#allocation3], 0  ;;  %s2219_s0 = inlined_call_operand.vmem [shape: f32[8,256], index: 0, kind: input, shape index: {}]   ;;  %s2220_s1 = inlined_call_operand.vmem [shape: f32[128,8], index: 1, kind: input, shape index: {}]   ;;  %s2221_s2 = inlined_call_operand.vmem [shape: f32[128,1], index: 2, kind: input, shape index: {}]   ;;  %s2222_s3 = inlined_call_operand.vmem [shape: bf16[128,128], index: 3, kind: input, shape index: {}]   ;;  %s2223_s4 = inlined_call_operand.vmem [shape: f32[128,1], index: 4, kind: input, shape index: {}]   ;;  %s2224_s5 = inlined_call_operand.vmem [shape: bf16[128,128], index: 5, kind: input, shape index: {}]   ;;  %s2225_s6 = inlined_call_operand.vmem [shape: f32[128,1], index: 6, kind: input, shape index: {}]   ;;  %s2226_s7 = inlined_call_operand.vmem [shape: bf16[8,128], index: 7, kind: input, shape index: {}]   ;;  %s2227_s8 = inlined_call_operand.vmem [shape: f32[8,1], index: 8, kind: input, shape index: {}]   ;;  %s2228_s9 = inlined_call_operand.hbm [shape: f32[8,256], index: 9, kind: output, shape index: {}]  }
   0x1   :  { %16 = vsyncpa [#allocation3 + $0x1], 0  ;;  %s1825_s30 = smov 0   ;;  %s1827_s10 = smov 0  }
   0x2   :  { %s1829_s11 = smov 0   ;;  %s1831_s12 = smov 0  }
   0x3 LB: > { %s1846_s13 = sadd.s32 4294967295, %s1769_s12   ;;  %s1343_s14 = sadd.s32 4294967294, %s1769_s12   ;;  %s1769_s12 = sphi %s1831_s12, %s2236_s12   ;;  %s1765_s11 = sphi %s1829_s11, %s2235_s11   ;;  %s1761_s10 = sphi %s1827_s10, %s2234_s10   ;;  %s1757_s30 = sphi %s1825_s30, %s2233_s30  }
   0x4   : > { %s1850_s15 = sadd.s32 1, %s1769_s12   ;;  %s223_s16 = sadd.s32 1, %s1765_s11 }
   0x5   : > { %s220_s17 = ssub.s32 %s1769_s12, %s1850_s15  ;;  %p233_p0 = scmp.ne.s32.totalorder %s1765_s11, %s1761_s10 }
   0x6   : > { %p221_p1 = scmp.eq.s32.totalorder %s220_s17, 0  ;;  %p234_p2 = scmp.eq.s32.totalorder %s1846_s13, 1 }
   0x7   : > { %p239_p3 = scmp.ne.s32.totalorder %s1761_s10, %s1757_s30  ;;  %p240_p4 = scmp.eq.s32.totalorder %s1343_s14, 1 }
   0x8   : > { %s1861_s18 = scalar_select %p221_p1, %s1765_s11, %s223_s16  }
   0x9   : > { %p1863_p5 = por %p234_p2, %p233_p0  ;;  %p1867_p6 = por %p240_p4, %p239_p3 }
   0xa   : > { %2229 = sst [smem:[#allocation5_spill]] %s1861_s18  ;;  %p1346_p7 = scmp.ge.s32.totalorder %s1769_s12, 1 }
   0xb   : > { %p289_p8 = scmp.lt.s32.totalorder %s1769_s12, 3 }
   0xd   : > { %p290_p9 = pnand %p1346_p7, %p289_p8 }
   0xe   : > { %p324_p10 = scmp.lt.s32.totalorder (!%p290_p9), %s1846_s13, 1  ;;  %s321_s21 = sand.u32 (!%p290_p9), 1, %s1761_s10  }
   0xf   : > { %293 = sbr.rel (%p290_p9) target bundleno = 1050 (0x41a), region = 56  ;;  %s1347_s22 = sshll.u32 (!%p290_p9), %s321_s21, 3 }
  0x10   : > { %s323_s24 = scalar_lea.vmem (!%p290_p9), [#allocation2], %s1347_s22  ;;  %s1271_s29 = scalar_lea.sflag (!%p290_p9), [#allocation3], %s321_s21 }
  0x11   : > { %s1284_s26 = sshll.u32 (!%p290_p9), %s323_s24, 4  ;;  %s1774_s16 = smov (!%p290_p9), [#allocation2]   ;;  %s2180_s26 = int_to_ptr.vmem [resolvable:$true] %s1284_s26 }
  0x12   : > { %s1713_s18 = sshll.u32 (!%p290_p9), %s1774_s16, 4  ;;  %s1714_s18 = int_to_ptr.vmem [resolvable:$false] %s1713_s18 }
  0x13   : > { %p1716_p0 = scmp.lt.s32.totalorder (!%p290_p9), %s2180_s26, %s1714_s18 }
  0x14   : > { %v360_v0 = vld [vmem:[%s2221_s2 + $0x70] sm:$0xff]  ;;  %v330_v1 = vld [vmem:[%s2220_s1] sm:$0xff]  ;;  %vm442_vm0 = vcmask 64512   ;;  %v1771_v2 = vmov 0   ;;  %s325_s25 = scalar_select %p324_p10, %s1846_s13, 1  ;;  %v361_v4 = vld [vmem:[%s2221_s2 + $0x78] sm:$0xff] }
  0x15   : > { %1595 = vset.pattern.permute.xlu0 %v1771_v2  ;;  %1445 = vmatprep.mubr.msk.f32.mxu0 %vm442_vm0, %v330_v1  ;;  %v358_v3 = vld [vmem:[%s2221_s2 + $0x60] sm:$0xff]  ;;  %v359_v5 = vld [vmem:[%s2221_s2 + $0x68] sm:$0xff]  ;;  %v332_v8 = vld [vmem:[%s2220_s1 + $0x10] sm:$0xff]  ;;  %vm1773_vm1 = vmmov 0  }
  0x16   : > { %434 = vperm.xlu0 %1595, %v360_v0   ;;  %1596 = vset.pattern.permute.xlu1 %v1771_v2  ;;  %s1348_s14 = sshll.u32 %s325_s25, 3  ;;  %v331_v7 = vld [vmem:[%s2220_s1 + $0x8] sm:$0xff]  ;;  %v356_v9 = vld [vmem:[%s2221_s2 + $0x50] sm:$0xff]  ;;  %v357_v10 = vld [vmem:[%s2221_s2 + $0x58] sm:$0xff] }
  0x17   : > { %424 = vperm.xlu1 %1596, %v358_v3   ;;  %s327_s23 = scalar_lea.vmem %s2219_s0, %s1348_s14  ;;  %v333_v11 = vld [vmem:[%s2220_s1 + $0x18] sm:$0xff]  ;;  %v334_v12 = vld [vmem:[%s2220_s1 + $0x20] sm:$0xff]  ;;  %v355_v14 = vld [vmem:[%s2221_s2 + $0x48] sm:$0xff]  ;;  %s1715_s14 = scalar_lea.vmem %s1714_s18, 256 }
  0x18   : > { %v329_v6 = vld [vmem:[%s327_s23] sm:$0xff]  ;;  %v335_v15 = vld [vmem:[%s2220_s1 + $0x28] sm:$0xff]  ;;  %v336_v16 = vld [vmem:[%s2220_s1 + $0x30] sm:$0xff]  ;;  %s1382_s23 = sshll.u32 %s1846_s13, 7  ;;  %s1709_s13 = scalar_lea.vmem %s2180_s26, 128 }
  0x19   : > { %1443 = vmatprep.subr.mxu0 %v329_v6  ;;  %v354_v13 = vld [vmem:[%s2221_s2 + $0x40] sm:$0xff]  ;;  %v352_v17 = vld [vmem:[%s2221_s2 + $0x30] sm:$0xff]  ;;  %v353_v18 = vld [vmem:[%s2221_s2 + $0x38] sm:$0xff]  ;;  %s2178_s28 = scalar_lea.hbm %s2228_s9, %s1382_s23  ;;  %p1710_p11 = scmp.ne.s32.totalorder %s2180_s26, %s1709_s13 }
  0x1a   : > { %439 = vperm.xlu0 %1595, %v361_v4   ;;  %1444 = vmatpush3.msra.mxu0 %v329_v6  ;;  %v337_v19 = vld [vmem:[%s2220_s1 + $0x38] sm:$0xff]  ;;  %v338_v20 = vld [vmem:[%s2220_s1 + $0x40] sm:$0xff]  ;;  %v351_v22 = vld [vmem:[%s2221_s2 + $0x28] sm:$0xff]  ;;  %p1717_p1 = scmp.lt.s32.totalorder %s1715_s14, %s1709_s13 }
  0x1b   : > { %429 = vperm.xlu1 %1596, %v359_v5   ;;  %1446 = vmatmul.mubr.msk.f32.vlgmr.msra.gmra.mxu0 %vm442_vm0, %v331_v7  ;;  %v350_v21 = vld [vmem:[%s2221_s2 + $0x20] sm:$0xff]  ;;  %v339_v23 = vld [vmem:[%s2220_s1 + $0x48] sm:$0xff]  ;;  %v340_v24 = vld [vmem:[%s2220_s1 + $0x50] sm:$0xff]  ;;  %p1711_p12 = pnand %p1710_p11, %p1863_p5 }
  0x1c   : > { %1448 = vmatprep.mubr.msk.f32.mxu0 %vm442_vm0, %v332_v8  ;;  %v348_v25 = vld [vmem:[%s2221_s2 + $0x10] sm:$0xff]  ;;  %v349_v26 = vld [vmem:[%s2221_s2 + $0x18] sm:$0xff]  ;;  %v342_v28 = vld [vmem:[%s2220_s1 + $0x60] sm:$0xff]  ;;  %p1718_p2 = por %p1717_p1, %p1716_p0 }
  0x1d   : > { %v341_v27 = vld [vmem:[%s2220_s1 + $0x58] sm:$0xff]  ;;  %v346_v29 = vld [vmem:[%s2221_s2] sm:$0xff]  ;;  %v347_v30 = vld [vmem:[%s2221_s2 + $0x8] sm:$0xff]  ;;  %p1712_p13 = pneg %p1711_p12 }
  0x1e   : > { %414 = vperm.xlu0 %1595, %v356_v9   ;;  %v343_v31 = vld [vmem:[%s2220_s1 + $0x68] sm:$0xff]  ;;  %v344_v32 = vld [vmem:[%s2220_s1 + $0x70] sm:$0xff]  ;;  %v683_v34 = vld [vmem:[%s2223_s4 + $0x78] sm:$0xff] }
  0x1f   : > { %419 = vperm.xlu1 %1596, %v357_v10   ;;  %1449 = vmatmul.mubr.msk.f32.gmra.mxu0 %vm442_vm0, %v333_v11  ;;  %v682_v33 = vld [vmem:[%s2223_s4 + $0x70] sm:$0xff]  ;;  %v345_v35 = vld [vmem:[%s2220_s1 + $0x78] sm:$0xff]  ;;  %v680_v36 = vld [vmem:[%s2223_s4 + $0x60] sm:$0xff]  ;;  %p1719_p3 = pnand %p1718_p2, %p1712_p13 }
  0x20   : > { %1451 = vmatprep.mubr.msk.f32.mxu0 %vm442_vm0, %v334_v12  ;;  %v681_v37 = vld [vmem:[%s2223_s4 + $0x68] sm:$0xff]  ;;  %v678_v38 = vld [vmem:[%s2223_s4 + $0x50] sm:$0xff]  ;;  %v679_v39 = vld [vmem:[%s2223_s4 + $0x58] sm:$0xff] }
  0x21   : > { %v676_v40 = vld [vmem:[%s2223_s4 + $0x40] sm:$0xff]  ;;  %v677_v41 = vld [vmem:[%s2223_s4 + $0x48] sm:$0xff]  ;;  %v674_v42 = vld [vmem:[%s2223_s4 + $0x30] sm:$0xff] }
  0x22   : > { %404 = vperm.xlu0 %1595, %v354_v13   ;;  %v675_v43 = vld [vmem:[%s2223_s4 + $0x38] sm:$0xff]  ;;  %v672_v44 = vld [vmem:[%s2223_s4 + $0x20] sm:$0xff]  ;;  %v673_v45 = vld [vmem:[%s2223_s4 + $0x28] sm:$0xff] }
  0x23   : > { %409 = vperm.xlu1 %1596, %v355_v14   ;;  %1452 = vmatmul.mubr.msk.f32.gmra.mxu0 %vm442_vm0, %v335_v15  ;;  %v670_v46 = vld [vmem:[%s2223_s4 + $0x10] sm:$0xff]  ;;  %v671_v47 = vld [vmem:[%s2223_s4 + $0x18] sm:$0xff]  ;;  %v668_v48 = vld [vmem:[%s2223_s4] sm:$0xff] }
  0x24   : > { %1454 = vmatprep.mubr.msk.f32.mxu0 %vm442_vm0, %v336_v16  ;;  %v669_v49 = vld [vmem:[%s2223_s4 + $0x8] sm:$0xff]  ;;  %v963_v50 = vld [vmem:[%s2225_s6 + $0x70] sm:$0xff]  ;;  %v964_v51 = vld [vmem:[%s2225_s6 + $0x78] sm:$0xff] }
  0x25   : > { %v961_v52 = vld [vmem:[%s2225_s6 + $0x60] sm:$0xff]  ;;  %v962_v53 = vld [vmem:[%s2225_s6 + $0x68] sm:$0xff]  ;;  %v959_v54 = vld [vmem:[%s2225_s6 + $0x50] sm:$0xff] }
  0x26   : > { %394 = vperm.xlu0 %1595, %v352_v17   ;;  %v960_v55 = vld [vmem:[%s2225_s6 + $0x58] sm:$0xff]  ;;  %v957_v56 = vld [vmem:[%s2225_s6 + $0x40] sm:$0xff]  ;;  %v958_v57 = vld [vmem:[%s2225_s6 + $0x48] sm:$0xff] }
  0x27   : > { %399 = vperm.xlu1 %1596, %v353_v18   ;;  %1455 = vmatmul.mubr.msk.f32.gmra.mxu0 %vm442_vm0, %v337_v19  ;;  %v955_v58 = vld [vmem:[%s2225_s6 + $0x30] sm:$0xff]  ;;  %v956_v59 = vld [vmem:[%s2225_s6 + $0x38] sm:$0xff]  ;;  %v953_v60 = vld [vmem:[%s2225_s6 + $0x20] sm:$0xff] }
  0x28   : > { %1457 = vmatprep.mubr.msk.f32.mxu0 %vm442_vm0, %v338_v20  ;;  %v954_v61 = vld [vmem:[%s2225_s6 + $0x28] sm:$0xff]  ;;  %v951_v62 = vld [vmem:[%s2225_s6 + $0x10] sm:$0xff]  ;;  %v952_v63 = vld [vmem:[%s2225_s6 + $0x18] sm:$0xff] }
  0x29   : > { %v949_v0 = vld [vmem:[%s2225_s6] sm:$0xff]  ;;  %v950_v1 = vld [vmem:[%s2225_s6 + $0x8] sm:$0xff] }
  0x2a   : > { %384 = vperm.xlu0 %1595, %v350_v21   ;;  %v1215_v2 = vld [vmem:[%s2227_s8] sm:$0xff] }
  0x2b   : > { %389 = vperm.xlu1 %1596, %v351_v22   ;;  %1458 = vmatmul.mubr.msk.f32.gmra.mxu0 %vm442_vm0, %v339_v23  ;;  %v1597_v3 = vld [vmem:[%s2222_s3] sm:$0xff]  }
  0x2c   : > { %1460 = vmatprep.mubr.msk.f32.mxu0 %vm442_vm0, %v340_v24  ;;  %1485 = vmatprep.mubr.bf16.mxu1 %v1597_v3 }
  0x2e   : > { %374 = vperm.xlu0 %1595, %v348_v25  }
  0x2f   : > { %379 = vperm.xlu1 %1596, %v349_v26   ;;  %1461 = vmatmul.mubr.msk.f32.gmra.mxu0 %vm442_vm0, %v341_v27 }
  0x30   : > { %1463 = vmatprep.mubr.msk.f32.mxu0 %vm442_vm0, %v342_v28 }
  0x32   : > { %364 = vperm.xlu0 %1595, %v346_v29  }
  0x33   : > { %369 = vperm.xlu1 %1596, %v347_v30   ;;  %1464 = vmatmul.mubr.msk.f32.gmra.mxu0 %vm442_vm0, %v343_v31 }
  0x34   : > { %1466 = vmatprep.mubr.msk.f32.mxu0 %vm442_vm0, %v344_v32 }
  0x36   : > { %764 = vperm.xlu0 %1595, %v682_v33  }
  0x37   : > { %769 = vperm.xlu1 %1596, %v683_v34   ;;  %1467 = vmatmul.mubr.msk.f32.gmra.mxu0 %vm442_vm0, %v345_v35 }
  0x3a   : > { %754 = vperm.xlu0 %1595, %v680_v36  }
  0x3b   : > { %759 = vperm.xlu1 %1596, %v681_v37  }
  0x3e   : > { %744 = vperm.xlu0 %1595, %v678_v38  }
  0x3f   : > { %749 = vperm.xlu1 %1596, %v679_v39  }
  0x42   : > { %734 = vperm.xlu0 %1595, %v676_v40  }
  0x43   : > { %739 = vperm.xlu1 %1596, %v677_v41  }
  0x46   : > { %724 = vperm.xlu0 %1595, %v674_v42  }
  0x47   : > { %729 = vperm.xlu1 %1596, %v675_v43  }
  0x4a   : > { %714 = vperm.xlu0 %1595, %v672_v44  }
  0x4b   : > { %719 = vperm.xlu1 %1596, %v673_v45  }
  0x4e   : > { %704 = vperm.xlu0 %1595, %v670_v46  }
  0x4f   : > { %709 = vperm.xlu1 %1596, %v671_v47  }
  0x52   : > { %694 = vperm.xlu0 %1595, %v668_v48  }
  0x53   : > { %699 = vperm.xlu1 %1596, %v669_v49  }
  0x56   : > { %1045 = vperm.xlu0 %1595, %v963_v50  }
  0x57   : > { %1050 = vperm.xlu1 %1596, %v964_v51  }
  0x5a   : > { %1035 = vperm.xlu0 %1595, %v961_v52  }
  0x5b   : > { %1040 = vperm.xlu1 %1596, %v962_v53  }
  0x5e   : > { %1025 = vperm.xlu0 %1595, %v959_v54  }
  0x5f   : > { %1030 = vperm.xlu1 %1596, %v960_v55  }
  0x62   : > { %1015 = vperm.xlu0 %1595, %v957_v56  }
  0x63   : > { %1020 = vperm.xlu1 %1596, %v958_v57  }
  0x66   : > { %1005 = vperm.xlu0 %1595, %v955_v58  }
  0x67   : > { %1010 = vperm.xlu1 %1596, %v956_v59  }
  0x6a   : > { %995 = vperm.xlu0 %1595, %v953_v60  }
  0x6b   : > { %1000 = vperm.xlu1 %1596, %v954_v61  }
  0x6e   : > { %985 = vperm.xlu0 %1595, %v951_v62  }
  0x6f   : > { %990 = vperm.xlu1 %1596, %v952_v63  }
  0x72   : > { %975 = vperm.xlu0 %1595, %v949_v0  }
  0x73   : > { %980 = vperm.xlu1 %1596, %v950_v1  }
  0x76   : > { %1226 = vperm.xlu0 %1595, %v1215_v2  }
  0x91   : > { %v435_v9 = vpop.permute.xlu0 %434 }
  0x92   : > { %v425_v11 = vpop.permute.xlu1 %424 }
  0x95   : > { %v440_v14 = vpop.permute.xlu0 %439 }
  0x96   : > { %v430_v16 = vpop.permute.xlu1 %429 }
  0x99   : > { %v415_v19 = vpop.permute.xlu0 %414 }
  0x9a   : > { %v420_v21 = vpop.permute.xlu1 %419 }
  0x9d   : > { %v405_v25 = vpop.permute.xlu0 %404 }
  0x9e   : > { %v410_v28 = vpop.permute.xlu1 %409 }
  0xa1   : > { %v395_v33 = vpop.permute.xlu0 %394 }
  0xa2   : > { %v400_v35 = vpop.permute.xlu1 %399 }
  0xa5   : > { %v385_v38 = vpop.permute.xlu0 %384 }
  0xa6   : > { %v390_v40 = vpop.permute.xlu1 %389 }
  0xa9   : > { %v375_v46 = vpop.permute.xlu0 %374 }
  0xaa   : > { %v380_v50 = vpop.permute.xlu1 %379 }
  0xad   : > { %v365_v56 = vpop.permute.xlu0 %364 }
  0xae   : > { %v370_v60 = vpop.permute.xlu1 %369 }
  0xdb   : > { %v2092_v4 = vpop.f32.mrf.mxu0 }
  0xdc   : > { %v563_v61 = vadd.f32 %v2092_v4, %v370_v60 }
  0xdd   : > { %v2094_v5 = vpop.f32.mrf.mxu0 }
  0xde   : > { %v558_v57 = vadd.f32 %v2094_v5, %v365_v56 }
  0xdf   : > { %v1450_v6 = vpop.f32.mrf.mxu0 }
  0xe0   : > { %v573_v54 = vadd.f32 %v1450_v6, %v380_v50 }
  0xe1   : > { %v567_v7 = vpop.f32.mrf.mxu0 }
  0xe2   : > { %v568_v51 = vadd.f32 %v567_v7, %v375_v46 }
  0xe3   : > { %v1453_v8 = vpop.f32.mrf.mxu0 }
  0xe4   : > { %v583_v47 = vadd.f32 %v1453_v8, %v390_v40 }
  0xe5   : > { %v577_v10 = vpop.f32.mrf.mxu0 }
  0xe6   : > { %v578_v44 = vadd.f32 %v577_v10, %v385_v38 }
  0xe7   : > { %v1456_v12 = vpop.f32.mrf.mxu0 }
  0xe8   : > { %v593_v41 = vadd.f32 %v1456_v12, %v400_v35  ;;  %v1598_v12 = vld [vmem:[%s2222_s3 + $0x8] sm:$0xff]  }
  0xe9   : > { %v587_v13 = vpop.f32.mrf.mxu0 }
  0xea   : > { %v588_v39 = vadd.f32 %v587_v13, %v395_v33  ;;  %v1599_v13 = vld [vmem:[%s2222_s3 + $0x10] sm:$0xff]  }
  0xeb   : > { %v1459_v15 = vpop.f32.mrf.mxu0 }
  0xec   : > { %v603_v37 = vadd.f32 %v1459_v15, %v410_v28  ;;  %v1601_v15 = vld [vmem:[%s2222_s3 + $0x20] sm:$0xff]  }
  0xed   : > { %v597_v17 = vpop.f32.mrf.mxu0 }
  0xee   : > { %v598_v36 = vadd.f32 %v597_v17, %v405_v25  ;;  %v1603_v17 = vld [vmem:[%s2222_s3 + $0x30] sm:$0xff]  }
  0xef   : > { %v1462_v18 = vpop.f32.mrf.mxu0 }
  0xf0   : > { %v613_v34 = vadd.f32 %v1462_v18, %v420_v21  ;;  %v1604_v18 = vld [vmem:[%s2222_s3 + $0x38] sm:$0xff]  }
  0xf1   : > { %v607_v20 = vpop.f32.mrf.mxu0 }
  0xf2   : > { %v608_v32 = vadd.f32 %v607_v20, %v415_v19  ;;  %v1605_v19 = vld [vmem:[%s2224_s5] sm:$0xff]  }
  0xf3   : > { %v1465_v22 = vpop.f32.mrf.mxu0  ;;  %1517 = vmatprep.mubr.bf16.mxu0 %v1605_v19 }
  0xf4   : > { %v623_v30 = vadd.f32 %v1465_v22, %v430_v16  ;;  %v1602_v16 = vld [vmem:[%s2222_s3 + $0x28] sm:$0xff]  }
  0xf5   : > { %v617_v23 = vpop.f32.mrf.mxu0 }
  0xf6   : > { %v618_v24 = vadd.f32 %v617_v23, %v425_v11 }
  0xf7   : > { %v1468_v26 = vpop.f32.mrf.mxu0 }
  0xf8   : > { %v633_v27 = vadd.f32 %v1468_v26, %v440_v14  ;;  %1613 = vtanh.f32 %v618_v24  ;;  %v1600_v14 = vld [vmem:[%s2222_s3 + $0x18] sm:$0xff]   ;;  %v770_v24 = vpop.permute.xlu1 %769  ;;  %v765_v26 = vpop.permute.xlu0 %764 }
  0xf9   : > { %v627_v29 = vpop.f32.mrf.mxu0 }
  0xfa   : > { %v628_v31 = vadd.f32 %v627_v29, %v435_v9  ;;  %1615 = vtanh.f32 %v633_v27 }
  0xfc   : > { %1617 = vtanh.f32 %v628_v31  ;;  %v760_v29 = vpop.permute.xlu1 %759  ;;  %v755_v31 = vpop.permute.xlu0 %754 }
  0xfd   : > { %1619 = vtanh.f32 %v623_v30 }
  0xfe   : > { %1621 = vtanh.f32 %v608_v32 }
  0xff   : > { %1623 = vtanh.f32 %v613_v34 }
 0x100   : > { %1625 = vtanh.f32 %v598_v36  ;;  %v750_v34 = vpop.permute.xlu1 %749  ;;  %v745_v36 = vpop.permute.xlu0 %744 }
 0x101   : > { %1627 = vtanh.f32 %v603_v37 }
 0x102   : > { %1629 = vtanh.f32 %v588_v39 }
 0x103   : > { %1631 = vtanh.f32 %v593_v41 }
 0x104   : > { %1633 = vtanh.f32 %v578_v44  ;;  %v740_v39 = vpop.permute.xlu1 %739 }
 0x105   : > { %v1614_v42 = vpop.eup %1613  ;;  %1635 = vtanh.f32 %v583_v47 }
 0x106   : > { %1637 = vtanh.f32 %v568_v51 }
 0x107   : > { %v1616_v43 = vpop.eup %1615  ;;  %1639 = vtanh.f32 %v573_v54 }
 0x108   : > { %1641 = vtanh.f32 %v558_v57 }
 0x109   : > { %v1618_v45 = vpop.eup %1617  ;;  %1643 = vtanh.f32 %v563_v61 }
 0x10a   : > { %v691_v48 = vpack.c.bf16 %v1616_v43, %v1618_v45  ;;  %v1620_v49 = vpop.eup %1619 }
 0x10b   : > { %v690_v52 = vpack.c.bf16 %v1620_v49, %v1614_v42  ;;  %v1622_v53 = vpop.eup %1621  ;;  %v735_v42 = vpop.permute.xlu0 %734 }
 0x10c   : > { %1469 = vmatprep.subr.bf16.mxu1 %v691_v48  ;;  %v1624_v55 = vpop.eup %1623  ;;  %v730_v49 = vpop.permute.xlu1 %729 }
 0x10d   : > { %1470 = vmatpush3.bf16.msra.mxu1 %v691_v48  ;;  %v689_v58 = vpack.c.bf16 %v1624_v55, %v1622_v53  ;;  %v1626_v59 = vpop.eup %1625 }
 0x10e   : > { %1471 = vmatprep.subr.bf16.mxu1 %v690_v52  ;;  %v1628_v62 = vpop.eup %1627 }
 0x10f   : > { %v688_v63 = vpack.c.bf16 %v1628_v62, %v1626_v59  ;;  %v1630_v0 = vpop.eup %1629  ;;  %v725_v51 = vpop.permute.xlu0 %724 }
 0x110   : > { %v1632_v1 = vpop.eup %1631  ;;  %v720_v54 = vpop.permute.xlu1 %719 }
 0x111   : > { %1472 = vmatpush3.bf16.msra.mxu1 %v690_v52  ;;  %v687_v2 = vpack.c.bf16 %v1632_v1, %v1630_v0  ;;  %v1634_v3 = vpop.eup %1633 }
 0x112   : > { %1473 = vmatprep.subr.bf16.mxu1 %v689_v58  ;;  %v1636_v5 = vpop.eup %1635 }
 0x113   : > { %v686_v6 = vpack.c.bf16 %v1636_v5, %v1634_v3  ;;  %v1638_v7 = vpop.eup %1637  ;;  %v715_v56 = vpop.permute.xlu0 %714 }
 0x114   : > { %v1640_v4 = vpop.eup %1639  ;;  %v710_v61 = vpop.permute.xlu1 %709 }
 0x115   : > { %1474 = vmatpush3.bf16.msra.mxu1 %v689_v58  ;;  %v685_v8 = vpack.c.bf16 %v1640_v4, %v1638_v7  ;;  %v1642_v9 = vpop.eup %1641 }
 0x116   : > { %1475 = vmatprep.subr.bf16.mxu1 %v688_v63  ;;  %v1644_v10 = vpop.eup %1643 }
 0x117   : > { %v684_v11 = vpack.c.bf16 %v1644_v10, %v1642_v9 }
 0x119   : > { %1476 = vmatpush3.bf16.msra.mxu1 %v688_v63 }
 0x11a   : > { %1477 = vmatprep.subr.bf16.mxu1 %v687_v2 }
 0x11d   : > { %1478 = vmatpush3.bf16.msra.mxu1 %v687_v2  ;;  %v705_v2 = vpop.permute.xlu0 %704 }
 0x11e   : > { %1479 = vmatprep.subr.bf16.mxu1 %v686_v6 }
 0x121   : > { %1480 = vmatpush3.bf16.msra.mxu1 %v686_v6 }
 0x122   : > { %1481 = vmatprep.subr.bf16.mxu1 %v685_v8 }
 0x125   : > { %1482 = vmatpush3.bf16.msra.mxu1 %v685_v8  ;;  %v700_v8 = vpop.permute.xlu1 %699 }
 0x126   : > { %1483 = vmatprep.subr.bf16.mxu1 %v684_v11 }
 0x129   : > { %1484 = vmatpush3.bf16.msra.mxu1 %v684_v11 }
 0x12c   : > { %1486 = vmatmul.mubr.bf16.vlgmr.msra.gmra.mxu1 %v1598_v12  ;;  %v695_v12 = vpop.permute.xlu0 %694 }
 0x12d   : > { %1489 = vmatprep.mubr.bf16.mxu1 %v1599_v13 }
 0x134   : > { %1490 = vmatmul.mubr.bf16.gmra.mxu1 %v1600_v14 }
 0x135   : > { %1493 = vmatprep.mubr.bf16.mxu1 %v1601_v15 }
 0x13c   : > { %1494 = vmatmul.mubr.bf16.gmra.mxu1 %v1602_v16 }
 0x13d   : > { %1497 = vmatprep.mubr.bf16.mxu1 %v1603_v17 }
 0x144   : > { %1498 = vmatmul.mubr.bf16.gmra.mxu1 %v1604_v18 }
 0x1ec   : > { %v2122_v20 = vpop.f32.mrf.mxu1 }
 0x1ed   : > { %v863_v7 = vadd.f32 %v2122_v20, %v705_v2 }
 0x1ee   : > { %v2124_v21 = vpop.f32.mrf.mxu1 }
 0x1ef   : > { %v855_v13 = vadd.f32 %v2124_v21, %v695_v12 }
 0x1f0   : > { %v1488_v22 = vpop.f32.mrf.mxu1 }
 0x1f1   : > { %v866_v3 = vadd.f32 %v1488_v22, %v710_v61 }
 0x1f2   : > { %v2126_v23 = vpop.f32.mrf.mxu1 }
 0x1f3   : > { %v858_v9 = vadd.f32 %v2126_v23, %v700_v8 }
 0x1f4   : > { %v1491_v25 = vpop.f32.mrf.mxu1 }
 0x1f5   : > { %v879_v57 = vadd.f32 %v1491_v25, %v725_v51 }
 0x1f6   : > { %v870_v27 = vpop.f32.mrf.mxu1 }
 0x1f7   : > { %v871_v63 = vadd.f32 %v870_v27, %v715_v56 }
 0x1f8   : > { %v1492_v28 = vpop.f32.mrf.mxu1 }
 0x1f9   : > { %v882_v55 = vadd.f32 %v1492_v28, %v730_v49  ;;  %v1606_v28 = vld [vmem:[%s2224_s5 + $0x8] sm:$0xff]  }
 0x1fa   : > { %v873_v30 = vpop.f32.mrf.mxu1 }
 0x1fb   : > { %v874_v59 = vadd.f32 %v873_v30, %v720_v54  ;;  %v1608_v30 = vld [vmem:[%s2224_s5 + $0x18] sm:$0xff]  }
 0x1fc   : > { %v1495_v32 = vpop.f32.mrf.mxu1 }
 0x1fd   : > { %v895_v50 = vadd.f32 %v1495_v32, %v745_v36  ;;  %v1610_v32 = vld [vmem:[%s2224_s5 + $0x28] sm:$0xff]  }
 0x1fe   : > { %v886_v33 = vpop.f32.mrf.mxu1 }
 0x1ff   : > { %v887_v53 = vadd.f32 %v886_v33, %v735_v42  ;;  %v1611_v33 = vld [vmem:[%s2224_s5 + $0x30] sm:$0xff]  }
 0x200   : > { %v1496_v35 = vpop.f32.mrf.mxu1 }
 0x201   : > { %v898_v47 = vadd.f32 %v1496_v35, %v750_v34  ;;  %v1612_v34 = vld [vmem:[%s2224_s5 + $0x38] sm:$0xff]   ;;  %v1772_v35 = vmov 0.0  }
 0x202   : > { %v889_v37 = vpop.f32.mrf.mxu1  ;;  %1533 = vmatprep.subr.bf16.mxu1 %v1772_v35  ;;  %1549 = vmatprep.mubr.msk.bf16.mxu1 %vm1773_vm1, %v1772_v35 }
 0x203   : > { %v890_v52 = vadd.f32 %v889_v37, %v740_v39 }
 0x204   : > { %v1499_v38 = vpop.f32.mrf.mxu1 }
 0x205   : > { %v911_v40 = vadd.f32 %v1499_v38, %v765_v26 }
 0x206   : > { %v902_v41 = vpop.f32.mrf.mxu1 }
 0x207   : > { %v903_v43 = vadd.f32 %v902_v41, %v755_v31  ;;  %1645 = vtanh.f32 %v911_v40  ;;  %v1609_v31 = vld [vmem:[%s2224_s5 + $0x20] sm:$0xff]   ;;  %v1051_v41 = vpop.permute.xlu1 %1050 }
 0x208   : > { %v1500_v44 = vpop.f32.mrf.mxu1 }
 0x209   : > { %v914_v45 = vadd.f32 %v1500_v44, %v770_v24 }
 0x20a   : > { %v905_v46 = vpop.f32.mrf.mxu1 }
 0x20b   : > { %1647 = vtanh.f32 %v914_v45  ;;  %v906_v48 = vadd.f32 %v905_v46, %v760_v29  ;;  %v1607_v29 = vld [vmem:[%s2224_s5 + $0x10] sm:$0xff]   ;;  %v1041_v46 = vpop.permute.xlu1 %1040 }
 0x20c   : > { %1649 = vtanh.f32 %v903_v43  ;;  %v1046_v43 = vpop.permute.xlu0 %1045 }
 0x20d   : > { %1651 = vtanh.f32 %v906_v48 }
 0x20e   : > { %1653 = vtanh.f32 %v898_v47 }
 0x20f   : > { %1655 = vtanh.f32 %v895_v50  ;;  %v1031_v51 = vpop.permute.xlu1 %1030 }
 0x210   : > { %1657 = vtanh.f32 %v890_v52  ;;  %v1036_v48 = vpop.permute.xlu0 %1035 }
 0x211   : > { %1659 = vtanh.f32 %v887_v53 }
 0x212   : > { %1661 = vtanh.f32 %v882_v55 }
 0x213   : > { %1663 = vtanh.f32 %v879_v57  ;;  %v1021_v57 = vpop.permute.xlu1 %1020 }
 0x214   : > { %v1646_v58 = vpop.eup %1645  ;;  %1665 = vtanh.f32 %v874_v59  ;;  %v1026_v53 = vpop.permute.xlu0 %1025 }
 0x215   : > { %1667 = vtanh.f32 %v871_v63 }
 0x216   : > { %1669 = vtanh.f32 %v866_v3 }
 0x217   : > { %1671 = vtanh.f32 %v863_v7 }
 0x218   : > { %v1648_v60 = vpop.eup %1647  ;;  %1673 = vtanh.f32 %v858_v9 }
 0x219   : > { %v1650_v62 = vpop.eup %1649  ;;  %v972_v0 = vpack.c.bf16 %v1648_v60, %v1646_v58  ;;  %1675 = vtanh.f32 %v855_v13  ;;  %v1016_v60 = vpop.permute.xlu0 %1015 }
 0x21a   : > { %v1652_v1 = vpop.eup %1651 }
 0x21b   : > { %1501 = vmatprep.subr.bf16.mxu0 %v972_v0  ;;  %v971_v5 = vpack.c.bf16 %v1652_v1, %v1650_v62  ;;  %v1654_v6 = vpop.eup %1653  ;;  %v1011_v1 = vpop.permute.xlu1 %1010 }
 0x21c   : > { %1502 = vmatpush3.bf16.msra.mxu0 %v972_v0  ;;  %v1656_v4 = vpop.eup %1655 }
 0x21d   : > { %1503 = vmatprep.subr.bf16.mxu0 %v971_v5  ;;  %v970_v10 = vpack.c.bf16 %v1654_v6, %v1656_v4  ;;  %v1658_v11 = vpop.eup %1657  ;;  %v1006_v3 = vpop.permute.xlu0 %1005 }
 0x21e   : > { %v1660_v14 = vpop.eup %1659 }
 0x21f   : > { %v969_v15 = vpack.c.bf16 %v1658_v11, %v1660_v14  ;;  %v1662_v16 = vpop.eup %1661  ;;  %v1001_v7 = vpop.permute.xlu1 %1000 }
 0x220   : > { %1504 = vmatpush3.bf16.msra.mxu0 %v971_v5  ;;  %v1664_v17 = vpop.eup %1663 }
 0x221   : > { %1505 = vmatprep.subr.bf16.mxu0 %v970_v10  ;;  %v968_v18 = vpack.c.bf16 %v1662_v16, %v1664_v17  ;;  %v1666_v19 = vpop.eup %1665  ;;  %v996_v8 = vpop.permute.xlu0 %995 }
 0x222   : > { %v1668_v20 = vpop.eup %1667 }
 0x223   : > { %v967_v22 = vpack.c.bf16 %v1666_v19, %v1668_v20  ;;  %v1670_v23 = vpop.eup %1669 }
 0x224   : > { %1506 = vmatpush3.bf16.msra.mxu0 %v970_v10  ;;  %v1672_v24 = vpop.eup %1671 }
 0x225   : > { %1507 = vmatprep.subr.bf16.mxu0 %v969_v15  ;;  %v966_v21 = vpack.c.bf16 %v1670_v23, %v1672_v24  ;;  %v1674_v25 = vpop.eup %1673 }
 0x226   : > { %v1676_v26 = vpop.eup %1675 }
 0x227   : > { %v965_v27 = vpack.c.bf16 %v1674_v25, %v1676_v26 }
 0x228   : > { %1508 = vmatpush3.bf16.msra.mxu0 %v969_v15  ;;  %v991_v15 = vpop.permute.xlu1 %990 }
 0x229   : > { %1509 = vmatprep.subr.bf16.mxu0 %v968_v18 }
 0x22c   : > { %1510 = vmatpush3.bf16.msra.mxu0 %v968_v18  ;;  %v986_v18 = vpop.permute.xlu0 %985 }
 0x22d   : > { %1511 = vmatprep.subr.bf16.mxu0 %v967_v22 }
 0x230   : > { %1512 = vmatpush3.bf16.msra.mxu0 %v967_v22 }
 0x231   : > { %1513 = vmatprep.subr.bf16.mxu0 %v966_v21 }
 0x234   : > { %1514 = vmatpush3.bf16.msra.mxu0 %v966_v21  ;;  %v981_v21 = vpop.permute.xlu1 %980 }
 0x235   : > { %1515 = vmatprep.subr.bf16.mxu0 %v965_v27 }
 0x238   : > { %1516 = vmatpush3.bf16.msra.mxu0 %v965_v27 }
 0x23b   : > { %1518 = vmatmul.mubr.bf16.vlgmr.msra.gmra.mxu0 %v1606_v28  ;;  %v976_v28 = vpop.permute.xlu0 %975 }
 0x23c   : > { %1521 = vmatprep.mubr.bf16.mxu0 %v1607_v29 }
 0x243   : > { %1522 = vmatmul.mubr.bf16.gmra.mxu0 %v1608_v30 }
 0x244   : > { %1525 = vmatprep.mubr.bf16.mxu0 %v1609_v31 }
 0x24b   : > { %1526 = vmatmul.mubr.bf16.gmra.mxu0 %v1610_v32 }
 0x24c   : > { %1529 = vmatprep.mubr.bf16.mxu0 %v1611_v33 }
 0x253   : > { %1530 = vmatmul.mubr.bf16.gmra.mxu0 %v1612_v34 }
 0x2fb   : > { %v2154_v36 = vpop.f32.mrf.mxu0 }
 0x2fc   : > { %v1144_v23 = vadd.f32 %v2154_v36, %v986_v18 }
 0x2fd   : > { %v2156_v37 = vpop.f32.mrf.mxu0 }
 0x2fe   : > { %v1136_v29 = vadd.f32 %v2156_v37, %v976_v28 }
 0x2ff   : > { %v1520_v38 = vpop.f32.mrf.mxu0 }
 0x300   : > { %v1147_v19 = vadd.f32 %v1520_v38, %v991_v15 }
 0x301   : > { %v2158_v39 = vpop.f32.mrf.mxu0 }
 0x302   : > { %v1139_v25 = vadd.f32 %v2158_v39, %v981_v21 }
 0x303   : > { %v1523_v40 = vpop.f32.mrf.mxu0 }
 0x304   : > { %v1160_v10 = vadd.f32 %v1523_v40, %v1006_v3 }
 0x305   : > { %v1151_v42 = vpop.f32.mrf.mxu0 }
 0x306   : > { %v1152_v16 = vadd.f32 %v1151_v42, %v996_v8 }
 0x307   : > { %v1524_v44 = vpop.f32.mrf.mxu0 }
 0x308   : > { %v1163_v4 = vadd.f32 %v1524_v44, %v1011_v1 }
 0x309   : > { %v1154_v45 = vpop.f32.mrf.mxu0 }
 0x30a   : > { %v1155_v12 = vadd.f32 %v1154_v45, %v1001_v7  ;;  %v1214_v45 = vld [vmem:[%s2226_s7] sm:$0xf] }
 0x30b   : > { %v1527_v47 = vpop.f32.mrf.mxu0 }
 0x30c   : > { %v1176_v2 = vadd.f32 %v1527_v47, %v1026_v53 }
 0x30d   : > { %v1167_v49 = vpop.f32.mrf.mxu0 }
 0x30e   : > { %v1168_v6 = vadd.f32 %v1167_v49, %v1016_v60 }
 0x30f   : > { %v1528_v50 = vpop.f32.mrf.mxu0 }
 0x310   : > { %v1179_v0 = vadd.f32 %v1528_v50, %v1031_v51 }
 0x311   : > { %v1170_v52 = vpop.f32.mrf.mxu0 }
 0x312   : > { %v1171_v5 = vadd.f32 %v1170_v52, %v1021_v57 }
 0x313   : > { %v1531_v54 = vpop.f32.mrf.mxu0 }
 0x314   : > { %v1192_v55 = vadd.f32 %v1531_v54, %v1046_v43 }
 0x315   : > { %v1183_v56 = vpop.f32.mrf.mxu0 }
 0x316   : > { %1677 = vtanh.f32 %v1192_v55  ;;  %v1184_v62 = vadd.f32 %v1183_v56, %v1036_v48 }
 0x317   : > { %v1532_v58 = vpop.f32.mrf.mxu0 }
 0x318   : > { %v1195_v59 = vadd.f32 %v1532_v58, %v1051_v41 }
 0x319   : > { %v1186_v61 = vpop.f32.mrf.mxu0 }
 0x31a   : > { %1679 = vtanh.f32 %v1195_v59  ;;  %v1187_v63 = vadd.f32 %v1186_v61, %v1041_v46  ;;  %v1227_v46 = vpop.permute.xlu0 %1226 }
 0x31c   : > { %1681 = vtanh.f32 %v1187_v63 }
 0x31d   : > { %1683 = vtanh.f32 %v1184_v62 }
 0x31e   : > { %1685 = vtanh.f32 %v1179_v0 }
 0x31f   : > { %1687 = vtanh.f32 %v1176_v2 }
 0x320   : > { %1689 = vtanh.f32 %v1171_v5 }
 0x321   : > { %1691 = vtanh.f32 %v1168_v6 }
 0x322   : > { %1693 = vtanh.f32 %v1163_v4 }
 0x323   : > { %v1678_v9 = vpop.eup %1677  ;;  %1695 = vtanh.f32 %v1160_v10 }
 0x324   : > { %1697 = vtanh.f32 %v1155_v12 }
 0x325   : > { %1699 = vtanh.f32 %v1152_v16 }
 0x326   : > { %1701 = vtanh.f32 %v1147_v19 }
 0x327   : > { %v1680_v11 = vpop.eup %1679  ;;  %1703 = vtanh.f32 %v1144_v23 }
 0x328   : > { %v1223_v13 = vpack.c.bf16 %v1680_v11, %v1678_v9  ;;  %1705 = vtanh.f32 %v1139_v25 }
 0x329   : > { %v1682_v14 = vpop.eup %1681  ;;  %1707 = vtanh.f32 %v1136_v29 }
 0x32a   : > { %1534 = vmatpush3.bf16.msra.mxu1 %v1223_v13  ;;  %v1684_v17 = vpop.eup %1683 }
 0x32b   : > { %1535 = vmatprep.subr.bf16.mxu1 %v1772_v35  ;;  %v1222_v20 = vpack.c.bf16 %v1682_v14, %v1684_v17  ;;  %v1686_v22 = vpop.eup %1685 }
 0x32c   : > { %v1688_v24 = vpop.eup %1687 }
 0x32d   : > { %v1221_v26 = vpack.c.bf16 %v1686_v22, %v1688_v24  ;;  %v1690_v27 = vpop.eup %1689 }
 0x32e   : > { %1536 = vmatpush3.bf16.msra.mxu1 %v1222_v20  ;;  %v1692_v30 = vpop.eup %1691 }
 0x32f   : > { %1537 = vmatprep.subr.bf16.mxu1 %v1772_v35  ;;  %v1220_v31 = vpack.c.bf16 %v1690_v27, %v1692_v30  ;;  %v1694_v32 = vpop.eup %1693 }
 0x330   : > { %v1696_v33 = vpop.eup %1695 }
 0x331   : > { %v1219_v34 = vpack.c.bf16 %v1694_v32, %v1696_v33  ;;  %v1698_v36 = vpop.eup %1697 }
 0x332   : > { %1538 = vmatpush3.bf16.msra.mxu1 %v1221_v26  ;;  %v1700_v38 = vpop.eup %1699 }
 0x333   : > { %1539 = vmatprep.subr.bf16.mxu1 %v1772_v35  ;;  %v1218_v37 = vpack.c.bf16 %v1698_v36, %v1700_v38  ;;  %v1702_v39 = vpop.eup %1701 }
 0x334   : > { %v1704_v40 = vpop.eup %1703 }
 0x335   : > { %v1217_v41 = vpack.c.bf16 %v1702_v39, %v1704_v40  ;;  %v1706_v42 = vpop.eup %1705 }
 0x336   : > { %1540 = vmatpush3.bf16.msra.mxu1 %v1220_v31  ;;  %v1708_v43 = vpop.eup %1707 }
 0x337   : > { %1541 = vmatprep.subr.bf16.mxu1 %v1772_v35  ;;  %v1216_v44 = vpack.c.bf16 %v1706_v42, %v1708_v43 }
 0x33a   : > { %1542 = vmatpush3.bf16.msra.mxu1 %v1219_v34 }
 0x33b   : > { %1543 = vmatprep.subr.bf16.mxu1 %v1772_v35 }
 0x33e   : > { %1544 = vmatpush3.bf16.msra.mxu1 %v1218_v37 }
 0x33f   : > { %1545 = vmatprep.subr.bf16.mxu1 %v1772_v35 }
 0x342   : > { %1546 = vmatpush3.bf16.msra.mxu1 %v1217_v41 }
 0x343   : > { %1547 = vmatprep.subr.bf16.mxu1 %v1772_v35 }
 0x346   : > { %1548 = vmatpush3.bf16.msra.mxu1 %v1216_v44 }
 0x349   : > { %1550 = vmatmul.mubr.bf16.vlgmr.msra.gmra.mxu1 %v1214_v45 }
 0x409   : > { %v1263_v47 = vpop.f32.mrf.mxu1 }
 0x40a   : > { %v1264_v48 = vadd.f32 %v1263_v47, %v1227_v46 }
 0x40b   : > { %v1551_v35 = vpop.f32.mrf.mxu1 }
 0x40c   : > { %1269 = vst [vmem:[%s323_s24] sm:$0xff] %v1264_v48 }
 0x40d   : > { %v1266_v49 = vpop.f32.mrf.mxu1 }
 0x40e   : > { %1722 = shalt.err (!%p1719_p3)
}
 0x40f   : > { %s1723_s17 = scalar_lea.hbm %s2178_s28, 128  ;;  %s1727_s23 = scalar_lea.hbm %s2228_s9, 256 }
 0x410   : > { %p1724_p4 = scmp.ne.s32.totalorder %s2178_s28, %s1723_s17  ;;  %p1728_p9 = scmp.lt.s32.totalorder %s2178_s28, %s2228_s9 }
 0x411   : > { %p1729_p10 = scmp.lt.s32.totalorder %s1727_s23, %s1723_s17 }
 0x412   : > { %p1725_p7 = pnand %p1724_p4, %p1863_p5 }
 0x413   : > { %p1730_p11 = por %p1729_p10, %p1728_p9 }
 0x414   : > { %p1726_p8 = pneg %p1725_p7 }
 0x416   : > { %p1731_p12 = pnand %p1730_p11, %p1726_p8 }
 0x418   : > { %1734 = shalt.err (!%p1731_p12)
}
 0x419   : > { %1553 = dma.vmem_to_hbm [thread:$0]  (%p1863_p5), %s2180_s26, 128, %s2178_s28, %s1271_s29   ;;  %v1552_v50 = vpop.f32.mrf.mxu1 }
 0x41a PF: > { %p1559_p13 = scmp.ge.s32.totalorder %s1769_s12, 2  ;;  %s1296_s25 = sand.u32 1, %s1757_s30  }
 0x41b   : > { %s1297_s13 = scalar_lea.sflag [#allocation3], %s1296_s25 }
 0x41c   : > { %p1556_p0 = pnand %p1559_p13, %p1867_p6 }
 0x41e   : > { %p1557_p1 = pneg %p1556_p0 }
 0x420   : > { %1752 = dma.done.wait (%p1557_p1), %s1297_s13, 128  }
 0x421   : > { %1754 = vsyncadd (%p1557_p1), %s1297_s13, 4294967168  ;;  %s2232_s19 = sld [smem:[#allocation5_spill]]  ;;  %p19_p2 = scmp.ge.s32.totalorder %s1850_s15, 4  }
 0x422   : > { %s2233_s30 = smov %s1761_s10  ;;  %s2234_s10 = smov %s1765_s11 }
 0x423   : > { %s2236_s12 = smov %s1850_s15  ;;  %21 = sbr.rel (!%p19_p2) target bundleno = 3 (0x3), region = 91 }
 0x427   : > { %s2235_s11 = smov %s2232_s19 }
 0x428   :  { %1302 = vsyncpa [#allocation3], 1 }
 0x429   :  { %1304 = vsyncpa [#allocation3 + $0x1], 1 }

</bundles_post_ra>
